<compile_context>
chip_gen: v7x
topology: tpu7x:2x2x1
jax: 0.10.0
libtpu: 0.0.40
codegen_flags: <defaults>
</compile_context>

<pallas_src>
import jax
import jax.numpy as jnp
from jax.experimental import pallas as pl
from jax.experimental.pallas import tpu as pltpu


def _round_up(x, m):
    return ((x + m - 1) // m) * m


def worker_kernel(xin_ref, c_ref, wg_ref, bg_ref, wfc_ref, bfc_ref,
                  out_ref, h_out_ref, c_out_ref):
    """Fused LSTMCell + column-tiled fc.

    Grid axis 0 iterates over fc output-column tiles. The LSTM cell is
    evaluated once at step 0; h/c outputs use constant block indices so they
    remain VMEM-resident (accumulator pattern) for all subsequent fc tiles.
    """
    j = pl.program_id(0)
    Hp = h_out_ref.shape[1]

    @pl.when(j == 0)
    def _():
        # One fused gate matmul: [x_emb | labels | h] @ [W_ih ; W_hh] + bias.
        gates = (jnp.dot(xin_ref[...], wg_ref[...],
                         preferred_element_type=jnp.float32)
                 + bg_ref[...])
        # Lane-dense gate slabs (PyTorch LSTMCell gate order: i, f, g, o).
        i_g = jax.nn.sigmoid(gates[:, 0 * Hp:1 * Hp])
        f_g = jax.nn.sigmoid(gates[:, 1 * Hp:2 * Hp])
        g_g = jnp.tanh(gates[:, 2 * Hp:3 * Hp])
        o_g = jax.nn.sigmoid(gates[:, 3 * Hp:4 * Hp])
        c_new = f_g * c_ref[...] + i_g * g_g
        c_out_ref[...] = c_new
        h_out_ref[...] = o_g * jnp.tanh(c_new)

    # fc column tile j: (Bp, Hp) @ (Hp, TN) + (1, TN)  -> lane-dense store.
    out_ref[...] = (jnp.dot(h_out_ref[...], wfc_ref[...],
                            preferred_element_type=jnp.float32)
                    + bfc_ref[...])


class WorkerPallas:
    def __init__(self, vocab_size, n_labels, embed_dim, hidden_dim,
                 goal_out_size, goal_size, key, fc_tile=512):
        assert fc_tile % 128 == 0
        self.vocab_size = vocab_size
        self.n_labels = n_labels
        self.embed_dim = embed_dim
        self.hidden_dim = hidden_dim
        self.goal_out_size = goal_out_size
        self.goal_size = goal_size

        H, E, L = hidden_dim, embed_dim, n_labels
        K = E + L + H
        out_dim = goal_size * vocab_size
        self.K = K
        self.out_dim = out_dim

        ks = jax.random.split(key, 8)
        std = 0.1
        # nn.init.normal_(param, std=0.1) on every parameter.
        self.emb = std * jax.random.normal(ks[0], (vocab_size + 1, E),
                                           jnp.float32)
        # LSTMCell weights stored transposed w.r.t. PyTorch: [in, 4H], [H, 4H].
        self.w_ih = std * jax.random.normal(ks[1], (E + L, 4 * H), jnp.float32)
        self.w_hh = std * jax.random.normal(ks[2], (H, 4 * H), jnp.float32)
        self.b_ih = std * jax.random.normal(ks[3], (4 * H,), jnp.float32)
        self.b_hh = std * jax.random.normal(ks[4], (4 * H,), jnp.float32)
        # fc: Linear(hidden_dim, goal_size * vocab_size), stored transposed.
        self.w_fc = std * jax.random.normal(ks[5], (H, out_dim), jnp.float32)
        self.b_fc = std * jax.random.normal(ks[6], (out_dim,), jnp.float32)
        # goal_change is a parameter but unused in forward.
        self.goal_change = std * jax.random.normal(
            ks[7], (goal_out_size, goal_size), jnp.float32)

        # ---- fused / padded layouts for the kernel ----
        self.Hp = _round_up(H, 128)          # per-gate lane-dense slab width
        self.Kp = _round_up(K, 128)          # fused matmul K dim
        od128 = _round_up(out_dim, 128)
        self.TN = min(fc_tile, od128)        # fc column tile (multiple of 128)
        self.OD_pad = _round_up(out_dim, self.TN)

        w_all = jnp.concatenate([self.w_ih, self.w_hh], axis=0)   # (K, 4H)
        bias = self.b_ih + self.b_hh
        wg = jnp.zeros((self.Kp, 4 * self.Hp), jnp.float32)
        bg = jnp.zeros((1, 4 * self.Hp), jnp.float32)
        for g in range(4):
            wg = wg.at[:K, g * self.Hp:g * self.Hp + H].set(
                w_all[:, g * H:(g + 1) * H])
            bg = bg.at[0, g * self.Hp:g * self.Hp + H].set(
                bias[g * H:(g + 1) * H])
        self.wg, self.bg = wg, bg

        self.wfc_p = jnp.zeros((self.Hp, self.OD_pad), jnp.float32
                               ).at[:H, :out_dim].set(self.w_fc)
        self.bfc_p = jnp.zeros((1, self.OD_pad), jnp.float32
                               ).at[0, :out_dim].set(self.b_fc)

    def __call__(self, x_t, h_w_t, c_w_t, labels):
        B = x_t.shape[0]
        H, Hp, Kp, TN = self.hidden_dim, self.Hp, self.Kp, self.TN
        Bp = _round_up(B, 8)                 # f32 sublane multiple
        n_tiles = self.OD_pad // TN

        # Plain-JAX glue: O(B*E) embedding gather + input concat + padding.
        x_emb = jnp.take(self.emb, x_t, axis=0)
        xin = jnp.concatenate(
            [x_emb, labels.astype(jnp.float32), h_w_t], axis=1)     # (B, K)
        xin_p = jnp.zeros((Bp, Kp), jnp.float32).at[:B, :self.K].set(xin)
        c_p = jnp.zeros((Bp, Hp), jnp.float32).at[:B, :H].set(c_w_t)

        const2 = lambda j: (0, 0)
        tile2 = lambda j: (0, j)

        # Rough double-buffered VMEM footprint; set an explicit limit so the
        # same tiling stays inside v7x's 64 MiB physical VMEM.
        vmem_bytes = 4 * (2 * (Bp * Kp + Bp * Hp + Kp * 4 * Hp + 4 * Hp
                               + 2 * Bp * Hp)
                          + 2 * (Hp * TN + TN + Bp * TN))
        vmem_limit = int(min(max(2 * vmem_bytes, 4 << 20), 32 << 20))

        out_p, h_p, c_out_p = pl.pallas_call(
            worker_kernel,
            out_shape=(
                jax.ShapeDtypeStruct((Bp, self.OD_pad), jnp.float32),
                jax.ShapeDtypeStruct((Bp, Hp), jnp.float32),
                jax.ShapeDtypeStruct((Bp, Hp), jnp.float32),
            ),
            grid=(n_tiles,),
            in_specs=[
                pl.BlockSpec((Bp, Kp), const2),          # fused LSTM input
                pl.BlockSpec((Bp, Hp), const2),          # c_t
                pl.BlockSpec((Kp, 4 * Hp), const2),      # fused gate weight
                pl.BlockSpec((1, 4 * Hp), const2),       # fused gate bias
                pl.BlockSpec((Hp, TN), tile2),           # w_fc column tile
                pl.BlockSpec((1, TN), tile2),            # b_fc column tile
            ],
            out_specs=(
                pl.BlockSpec((Bp, TN), tile2),           # fc output tile
                pl.BlockSpec((Bp, Hp), const2),          # h_{t+1} (resident)
                pl.BlockSpec((Bp, Hp), const2),          # c_{t+1} (resident)
            ),
            compiler_params=pltpu.CompilerParams(
                dimension_semantics=("arbitrary",),
                vmem_limit_bytes=vmem_limit,
            ),
        )(xin_p, c_p, self.wg, self.bg, self.wfc_p, self.bfc_p)

        out = out_p[:B, :self.out_dim].reshape(
            B, self.vocab_size, self.goal_size)
        return out, h_p[:B, :H], c_out_p[:B, :H]

    # Pure-JAX reference (mirrors the PyTorch forward) for correctness checks.
    def reference(self, x_t, h_w_t, c_w_t, labels):
        H = self.hidden_dim
        x_emb = jnp.take(self.emb, x_t, axis=0)
        xin = jnp.concatenate([x_emb, labels, h_w_t], axis=1)
        w_all = jnp.concatenate([self.w_ih, self.w_hh], axis=0)
        gates = xin @ w_all + self.b_ih + self.b_hh
        i = jax.nn.sigmoid(gates[:, 0 * H:1 * H])
        f = jax.nn.sigmoid(gates[:, 1 * H:2 * H])
        g = jnp.tanh(gates[:, 2 * H:3 * H])
        o = jax.nn.sigmoid(gates[:, 3 * H:4 * H])
        c_new = f * c_w_t + i * g
        h_new = o * jnp.tanh(c_new)
        out = h_new @ self.w_fc + self.b_fc
        return (out.reshape(-1, self.vocab_size, self.goal_size), h_new, c_new)


def _run_case(vocab_size, n_labels, embed_dim, hidden_dim, goal_out_size,
              goal_size, batch, seed):
    key = jax.random.PRNGKey(seed)
    k_param, k_x, k_h, k_c, k_lab = jax.random.split(key, 5)

    worker = WorkerPallas(vocab_size, n_labels, embed_dim, hidden_dim,
                          goal_out_size, goal_size, k_param)

    x_t = jax.random.randint(k_x, (batch,), 0, vocab_size + 1, dtype=jnp.int32)
    h_w_t = 0.1 * jax.random.normal(k_h, (batch, hidden_dim), jnp.float32)
    c_w_t = 0.1 * jax.random.normal(k_c, (batch, hidden_dim), jnp.float32)
    labels = jax.random.normal(k_lab, (batch, n_labels), jnp.float32)

    out, h_tp1, c_tp1 = worker(x_t, h_w_t, c_w_t, labels)
    jax.block_until_ready((out, h_tp1, c_tp1))

    ref_out, ref_h, ref_c = worker.reference(x_t, h_w_t, c_w_t, labels)
    assert out.shape == (batch, vocab_size, goal_size)
    assert jnp.allclose(out, ref_out, atol=1e-4), "fc output mismatch"
    assert jnp.allclose(h_tp1, ref_h, atol=1e-4), "h mismatch"
    assert jnp.allclose(c_tp1, ref_c, atol=1e-4), "c mismatch"


if __name__ == "__main__":
    # Small, forward-consistent shapes (single fc tile).
    _run_case(vocab_size=12, n_labels=3, embed_dim=8, hidden_dim=32,
              goal_out_size=16, goal_size=4, batch=4, seed=0)
    # Slightly wider output to exercise the multi-tile fc grid path
    # (out_dim = 640 -> two 512/128-wide column tiles, resident h/c reuse).
    _run_case(vocab_size=160, n_labels=3, embed_dim=8, hidden_dim=32,
              goal_out_size=16, goal_size=4, batch=4, seed=0)
    print("KERNEL_OK")
</pallas_src>

<mosaic_0001>
module attributes {stable_mosaic.version = 11 : i64} {
  func.func @worker_kernel(%arg0: i32, %arg1: memref<8x128xf32, #tpu.memory_space<vmem>>, %arg2: memref<8x128xf32, #tpu.memory_space<vmem>>, %arg3: memref<128x512xf32, #tpu.memory_space<vmem>>, %arg4: memref<1x512xf32, #tpu.memory_space<vmem>>, %arg5: memref<128x128xf32, #tpu.memory_space<vmem>>, %arg6: memref<1x128xf32, #tpu.memory_space<vmem>>, %arg7: memref<8x128xf32, #tpu.memory_space<vmem>>, %arg8: memref<8x128xf32, #tpu.memory_space<vmem>>, %arg9: memref<8x128xf32, #tpu.memory_space<vmem>>) attributes {dimension_semantics = [#tpu.dimension_semantics<arbitrary>], iteration_bounds = array<i64: 1>, scalar_prefetch = 0 : i64, scratch_operands = 0 : i64, tpu.core_type = #tpu.core_type<tc>, window_params = [{pipeline_mode = #tpu.pipeline_mode<synchronous>, transform_indices = @transform_0, window_bounds = array<i64: 8, 128>}, {pipeline_mode = #tpu.pipeline_mode<synchronous>, transform_indices = @transform_1, window_bounds = array<i64: 8, 128>}, {pipeline_mode = #tpu.pipeline_mode<synchronous>, transform_indices = @transform_2, window_bounds = array<i64: 128, 512>}, {pipeline_mode = #tpu.pipeline_mode<synchronous>, transform_indices = @transform_3, window_bounds = array<i64: 1, 512>}, {transform_indices = @transform_4, window_bounds = array<i64: 128, 128>}, {transform_indices = @transform_5, window_bounds = array<i64: 1, 128>}, {transform_indices = @transform_6, window_bounds = array<i64: 8, 128>}, {pipeline_mode = #tpu.pipeline_mode<synchronous>, transform_indices = @transform_7, window_bounds = array<i64: 8, 128>}, {pipeline_mode = #tpu.pipeline_mode<synchronous>, transform_indices = @transform_8, window_bounds = array<i64: 8, 128>}]} {
    %c0_i32 = arith.constant 0 : i32
    %0 = arith.cmpi eq, %arg0, %c0_i32 : i32
    %1 = arith.extui %0 : i1 to i32
    %c0_i32_0 = arith.constant 0 : i32
    %2 = arith.cmpi ne, %1, %c0_i32_0 : i32
    scf.if %2 {
      %c0_8 = arith.constant 0 : index
      %c0_9 = arith.constant 0 : index
      %10 = vector.load %arg1[%c0_8, %c0_9] : memref<8x128xf32, #tpu.memory_space<vmem>>, vector<8x128xf32>
      %c0_10 = arith.constant 0 : index
      %c0_11 = arith.constant 0 : index
      %11 = vector.load %arg3[%c0_10, %c0_11] : memref<128x512xf32, #tpu.memory_space<vmem>>, vector<128x512xf32>
      %cst_12 = arith.constant dense<0.000000e+00> : vector<8x512xf32>
      %12 = tpu.matmul %10, %11, %cst_12 {dimension_numbers = #tpu.dot_dimension_numbers<[1], [0], [0], [1], [0, 0, 1, 1], [], []>} : vector<8x128xf32>, vector<128x512xf32>, vector<8x512xf32> -> vector<8x512xf32>
      %c0_13 = arith.constant 0 : index
      %c0_14 = arith.constant 0 : index
      %13 = vector.load %arg4[%c0_13, %c0_14] : memref<1x512xf32, #tpu.memory_space<vmem>>, vector<1x512xf32>
      %14 = vector.broadcast %13 : vector<1x512xf32> to vector<8x512xf32>
      %15 = arith.addf %12, %14 : vector<8x512xf32>
      %16 = vector.extract_strided_slice %15 {offsets = [0, 0], sizes = [8, 128], strides = [1, 1]} : vector<8x512xf32> to vector<8x128xf32>
      %17 = arith.negf %16 : vector<8x128xf32>
      %18 = math.exp %17 : vector<8x128xf32>
      %cst_15 = arith.constant 1.000000e+00 : f32
      %19 = vector.broadcast %cst_15 : f32 to vector<8x128xf32>
      %20 = arith.addf %19, %18 : vector<8x128xf32>
      %21 = arith.divf %19, %20 : vector<8x128xf32>
      %22 = vector.extract_strided_slice %15 {offsets = [0, 128], sizes = [8, 128], strides = [1, 1]} : vector<8x512xf32> to vector<8x128xf32>
      %23 = arith.negf %22 : vector<8x128xf32>
      %24 = math.exp %23 : vector<8x128xf32>
      %cst_16 = arith.constant 1.000000e+00 : f32
      %25 = vector.broadcast %cst_16 : f32 to vector<8x128xf32>
      %26 = arith.addf %25, %24 : vector<8x128xf32>
      %27 = arith.divf %25, %26 : vector<8x128xf32>
      %28 = vector.extract_strided_slice %15 {offsets = [0, 256], sizes = [8, 128], strides = [1, 1]} : vector<8x512xf32> to vector<8x128xf32>
      %29 = math.tanh %28 : vector<8x128xf32>
      %30 = vector.extract_strided_slice %15 {offsets = [0, 384], sizes = [8, 128], strides = [1, 1]} : vector<8x512xf32> to vector<8x128xf32>
      %31 = arith.negf %30 : vector<8x128xf32>
      %32 = math.exp %31 : vector<8x128xf32>
      %cst_17 = arith.constant 1.000000e+00 : f32
      %33 = vector.broadcast %cst_17 : f32 to vector<8x128xf32>
      %34 = arith.addf %33, %32 : vector<8x128xf32>
      %35 = arith.divf %33, %34 : vector<8x128xf32>
      %c0_18 = arith.constant 0 : index
      %c0_19 = arith.constant 0 : index
      %36 = vector.load %arg2[%c0_18, %c0_19] : memref<8x128xf32, #tpu.memory_space<vmem>>, vector<8x128xf32>
      %37 = arith.mulf %27, %36 : vector<8x128xf32>
      %38 = arith.mulf %21, %29 : vector<8x128xf32>
      %39 = arith.addf %37, %38 : vector<8x128xf32>
      %c0_20 = arith.constant 0 : index
      %c0_21 = arith.constant 0 : index
      %40 = vector.load %arg9[%c0_20, %c0_21] : memref<8x128xf32, #tpu.memory_space<vmem>>, vector<8x128xf32>
      tpu.vector_store %arg9[%c0_20, %c0_21], %39 {strides = array<i32>} : memref<8x128xf32, #tpu.memory_space<vmem>>, vector<8x128xf32>,
      %41 = math.tanh %39 : vector<8x128xf32>
      %42 = arith.mulf %35, %41 : vector<8x128xf32>
      %c0_22 = arith.constant 0 : index
      %c0_23 = arith.constant 0 : index
      %43 = vector.load %arg8[%c0_22, %c0_23] : memref<8x128xf32, #tpu.memory_space<vmem>>, vector<8x128xf32>
      tpu.vector_store %arg8[%c0_22, %c0_23], %42 {strides = array<i32>} : memref<8x128xf32, #tpu.memory_space<vmem>>, vector<8x128xf32>,
    } else {
    }
    %c0 = arith.constant 0 : index
    %c0_1 = arith.constant 0 : index
    %3 = vector.load %arg8[%c0, %c0_1] : memref<8x128xf32, #tpu.memory_space<vmem>>, vector<8x128xf32>
    %c0_2 = arith.constant 0 : index
    %c0_3 = arith.constant 0 : index
    %4 = vector.load %arg5[%c0_2, %c0_3] : memref<128x128xf32, #tpu.memory_space<vmem>>, vector<128x128xf32>
    %cst = arith.constant dense<0.000000e+00> : vector<8x128xf32>
    %5 = tpu.matmul %3, %4, %cst {dimension_numbers = #tpu.dot_dimension_numbers<[1], [0], [0], [1], [0, 0, 1, 1], [], []>} : vector<8x128xf32>, vector<128x128xf32>, vector<8x128xf32> -> vector<8x128xf32>
    %c0_4 = arith.constant 0 : index
    %c0_5 = arith.constant 0 : index
    %6 = vector.load %arg6[%c0_4, %c0_5] : memref<1x128xf32, #tpu.memory_space<vmem>>, vector<1x128xf32>
    %7 = vector.broadcast %6 : vector<1x128xf32> to vector<8x128xf32>
    %8 = arith.addf %5, %7 : vector<8x128xf32>
    %c0_6 = arith.constant 0 : index
    %c0_7 = arith.constant 0 : index
    %9 = vector.load %arg7[%c0_6, %c0_7] : memref<8x128xf32, #tpu.memory_space<vmem>>, vector<8x128xf32>
    tpu.vector_store %arg7[%c0_6, %c0_7], %8 {strides = array<i32>} : memref<8x128xf32, #tpu.memory_space<vmem>>, vector<8x128xf32>,
    return
  }
  func.func @transform_0(%arg0: i32) -> (i32, i32) {
    %c0_i32 = arith.constant 0 : i32
    %c0_i32_0 = arith.constant 0 : i32
    %c0_i32_1 = arith.constant 0 : i32
    return %c0_i32, %c0_i32_0 : i32, i32
  }
  func.func @transform_1(%arg0: i32) -> (i32, i32) {
    %c0_i32 = arith.constant 0 : i32
    %c0_i32_0 = arith.constant 0 : i32
    %c0_i32_1 = arith.constant 0 : i32
    return %c0_i32, %c0_i32_0 : i32, i32
  }
  func.func @transform_2(%arg0: i32) -> (i32, i32) {
    %c0_i32 = arith.constant 0 : i32
    %c0_i32_0 = arith.constant 0 : i32
    %c0_i32_1 = arith.constant 0 : i32
    return %c0_i32, %c0_i32_0 : i32, i32
  }
  func.func @transform_3(%arg0: i32) -> (i32, i32) {
    %c0_i32 = arith.constant 0 : i32
    %c0_i32_0 = arith.constant 0 : i32
    %c0_i32_1 = arith.constant 0 : i32
    return %c0_i32, %c0_i32_0 : i32, i32
  }
  func.func @transform_4(%arg0: i32) -> (i32, i32) {
    %c0_i32 = arith.constant 0 : i32
    %c0_i32_0 = arith.constant 0 : i32
    return %c0_i32, %arg0 : i32, i32
  }
  func.func @transform_5(%arg0: i32) -> (i32, i32) {
    %c0_i32 = arith.constant 0 : i32
    %c0_i32_0 = arith.constant 0 : i32
    return %c0_i32, %arg0 : i32, i32
  }
  func.func @transform_6(%arg0: i32) -> (i32, i32) {
    %c0_i32 = arith.constant 0 : i32
    %c0_i32_0 = arith.constant 0 : i32
    return %c0_i32, %arg0 : i32, i32
  }
  func.func @transform_7(%arg0: i32) -> (i32, i32) {
    %c0_i32 = arith.constant 0 : i32
    %c0_i32_0 = arith.constant 0 : i32
    %c0_i32_1 = arith.constant 0 : i32
    return %c0_i32, %c0_i32_0 : i32, i32
  }
  func.func @transform_8(%arg0: i32) -> (i32, i32) {
    %c0_i32 = arith.constant 0 : i32
    %c0_i32_0 = arith.constant 0 : i32
    %c0_i32_1 = arith.constant 0 : i32
    return %c0_i32, %c0_i32_0 : i32, i32
  }
}

</mosaic_0001>

<bundles_post_ra>
// kernel: tpu_custom_call.1
= control target key start
LH: loop header
LB: loop body
LE: loop exit
PB: predicated region body
PF: predicated region fallthrough
CT: control target
= control target key end

     0   :  { %14 = vsyncpa [#allocation3], 0  ;;  %s968_s0 = inlined_call_operand.hbm [shape: f32[8,128], index: 0, kind: input, shape index: {}]   ;;  %s969_s1 = inlined_call_operand.hbm [shape: f32[8,128], index: 1, kind: input, shape index: {}]   ;;  %s970_s2 = inlined_call_operand.hbm [shape: f32[128,512], index: 2, kind: input, shape index: {}]   ;;  %s971_s3 = inlined_call_operand.vmem [shape: f32[1,512], index: 3, kind: input, shape index: {}]   ;;  %s972_s4 = inlined_call_operand.hbm [shape: f32[128,128], index: 4, kind: input, shape index: {}]   ;;  %s973_s5 = inlined_call_operand.vmem [shape: f32[1,128], index: 5, kind: input, shape index: {}]   ;;  %s974_s6 = inlined_call_operand.hbm [shape: f32[8,128], index: 6, kind: output, shape index: {0}]   ;;  %s975_s7 = inlined_call_operand.hbm [shape: f32[8,128], index: 7, kind: output, shape index: {1}]   ;;  %s976_s8 = inlined_call_operand.hbm [shape: f32[8,128], index: 8, kind: output, shape index: {2}]  }
   0x1   :  { %15 = vsyncpa [#allocation6], 0 }
   0x2   :  { %16 = vsyncpa [#allocation9], 0 }
   0x3   :  { %17 = vsyncpa [#allocation4], 0 }
   0x4   :  { %18 = vsyncpa [#allocation12], 0  ;;  %s816_s27 = smov [#allocation5]   ;;  %s817_s29 = smov [#allocation2]  }
   0x5   :  { %s35_s28 = sshll.u32 %s816_s27, 4  ;;  %s25_s30 = sshll.u32 %s817_s29, 4  ;;  %s36_s28 = int_to_ptr.vmem [resolvable:$true] %s35_s28  ;;  %s26_s30 = int_to_ptr.vmem [resolvable:$true] %s25_s30 }
   0x6   :  { %s652_s11 = scalar_lea.hbm %s969_s1, 128 }
   0x7   :  { %p653_p0 = scmp.ne.s32.totalorder %s969_s1, %s652_s11  ;;  %p656_p1 = scmp.lt.u32.totalorder %s652_s11, %s969_s1 }
   0x9   :  { %p658_p2 = pnand %p656_p1, %p653_p0 }
   0xb   :  { %661 = shalt.err (!%p658_p2)
}
   0xc   :  { %s662_s16 = scalar_lea.vmem %s36_s28, 128  ;;  %p667_p4 = scmp.lt.s32.totalorder %s36_s28, %s36_s28 }
   0xd   :  { %p663_p3 = scmp.ne.s32.totalorder %s36_s28, %s662_s16  ;;  %p668_p5 = scmp.lt.s32.totalorder %s662_s16, %s662_s16 }
   0xf   :  { %p669_p6 = por %p668_p5, %p667_p4 }
  0x11   :  { %p670_p7 = pnand %p669_p6, %p663_p3 }
  0x13   :  { %673 = shalt.err (!%p670_p7)
}
  0x14   :  { %38 = dma.hbm_to_vmem [thread:$0]  %s969_s1, 128, %s36_s28, [#allocation6]  }
  0x15   :  { %s674_s21 = scalar_lea.hbm %s968_s0, 128 }
  0x16   :  { %p675_p8 = scmp.ne.s32.totalorder %s968_s0, %s674_s21  ;;  %p678_p9 = scmp.lt.u32.totalorder %s674_s21, %s968_s0 }
  0x18   :  { %p680_p10 = pnand %p678_p9, %p675_p8 }
  0x1a   :  { %683 = shalt.err (!%p680_p10)
}
  0x1b   :  { %s684_s26 = scalar_lea.vmem %s26_s30, 128  ;;  %p689_p12 = scmp.lt.s32.totalorder %s26_s30, %s26_s30 }
  0x1c   :  { %p685_p11 = scmp.ne.s32.totalorder %s26_s30, %s684_s26  ;;  %p690_p13 = scmp.lt.s32.totalorder %s684_s26, %s684_s26 }
  0x1e   :  { %p691_p0 = por %p690_p13, %p689_p12 }
  0x20   :  { %p692_p1 = pnand %p691_p0, %p685_p11 }
  0x22   :  { %695 = shalt.err (!%p692_p1)
}
  0x23   :  { %28 = dma.hbm_to_vmem [thread:$0]  %s968_s0, 128, %s26_s30, [#allocation3]  }
  0x24   :  { %s818_s28 = smov [#allocation7]   ;;  %s696_s11 = scalar_lea.hbm %s970_s2, 8192 }
  0x25   :  { %s44_s29 = sshll.u32 %s818_s28, 4  ;;  %p697_p2 = scmp.ne.s32.totalorder %s970_s2, %s696_s11  ;;  %s45_s29 = int_to_ptr.vmem [resolvable:$true] %s44_s29 }
  0x26   :  { %p700_p3 = scmp.lt.u32.totalorder %s696_s11, %s970_s2 }
  0x28   :  { %p702_p4 = pnand %p700_p3, %p697_p2 }
  0x2a   :  { %705 = shalt.err (!%p702_p4)
}
  0x2b   :  { %s706_s16 = scalar_lea.vmem %s45_s29, 8192  ;;  %p711_p6 = scmp.lt.s32.totalorder %s45_s29, %s45_s29 }
  0x2c   :  { %p707_p5 = scmp.ne.s32.totalorder %s45_s29, %s706_s16  ;;  %p712_p7 = scmp.lt.s32.totalorder %s706_s16, %s706_s16 }
  0x2e   :  { %p713_p8 = por %p712_p7, %p711_p6 }
  0x30   :  { %p714_p9 = pnand %p713_p8, %p707_p5 }
  0x32   :  { %717 = shalt.err (!%p714_p9)
}
  0x33   :  { %s819_s0 = smov 512   ;;  %s820_s30 = smov 32  }
  0x34   :  { %50 = dma.hbm_to_vmem [thread:$0]  %s970_s2, 8192, %s45_s29, [#allocation6], %s819_s0, %s819_s0, %s820_s30  }
  0x35   :  { %s821_s19 = smov [#allocation8]   ;;  %s718_s23 = scalar_lea.hbm %s972_s4, 2048 }
  0x36   :  { %s58_s20 = sshll.u32 %s821_s19, 4  ;;  %p719_p10 = scmp.ne.s32.totalorder %s972_s4, %s718_s23  ;;  %s59_s20 = int_to_ptr.vmem [resolvable:$true] %s58_s20 }
  0x37   :  { %p722_p11 = scmp.lt.u32.totalorder %s718_s23, %s972_s4 }
  0x39   :  { %p724_p12 = pnand %p722_p11, %p719_p10 }
  0x3b   :  { %727 = shalt.err (!%p724_p12)
}
  0x3c   :  { %s728_s27 = scalar_lea.vmem %s59_s20, 2048  ;;  %p733_p0 = scmp.lt.s32.totalorder %s59_s20, %s59_s20 }
  0x3d   :  { %p729_p13 = scmp.ne.s32.totalorder %s59_s20, %s728_s27  ;;  %p734_p1 = scmp.lt.s32.totalorder %s728_s27, %s728_s27 }
  0x3f   :  { %p735_p2 = por %p734_p1, %p733_p0 }
  0x41   :  { %p736_p3 = pnand %p735_p2, %p729_p13 }
  0x43   :  { %739 = shalt.err (!%p736_p3)
}
  0x44   :  { %s822_s2 = smov 128   ;;  %s823_s28 = smov 8  }
  0x45   :  { %64 = dma.hbm_to_vmem [thread:$0]  %s972_s4, 2048, %s59_s20, [#allocation9], %s822_s2, %s822_s2, %s823_s28  }
  0x46   :  { %806 = dma.done.wait [#allocation3], 128  }
  0x47   :  { %807 = vsyncadd [#allocation3], 4294967168 }
  0x48   :  { %808 = dma.done.wait [#allocation6], 8320  }
  0x49   :  { %809 = vsyncadd [#allocation6], 4294958976 }
  0x4a   :  { %810 = dma.done.wait [#allocation9], 2048  }
  0x4b   :  { %811 = vsyncadd [#allocation9], 4294965248  ;;  %v824_v0 = vmov 0.0   ;;  %v85_v1 = vld [vmem:[#allocation7 + $0x8] sm:$0xff]  ;;  %v84_v3 = vld [vmem:[#allocation7] sm:$0xff]  ;;  %vm826_vm0 = vmmov 0  }
  0x4c   :  { %234 = vmatprep.mubr.f32.mxu0 %v824_v0  ;;  %305 = vmatprep.mubr.f32.mxu1 %v824_v0  ;;  %v89_v2 = vld [vmem:[#allocation7 + $0x28] sm:$0xff]  ;;  %v88_v5 = vld [vmem:[#allocation7 + $0x20] sm:$0xff]  ;;  %v87_v19 = vld [vmem:[#allocation7 + $0x18] sm:$0xff] }
  0x4d   :  { %v534_v4 = vpack.c.bf16 %v89_v2, %v85_v1  ;;  %v93_v6 = vld [vmem:[#allocation7 + $0x48] sm:$0xff]  ;;  %v536_v8 = vpack.c.bf16 %v88_v5, %v84_v3  ;;  %v92_v10 = vld [vmem:[#allocation7 + $0x40] sm:$0xff]  ;;  %v91_v20 = vld [vmem:[#allocation7 + $0x38] sm:$0xff] }
  0x4e   :  { %v97_v7 = vld [vmem:[#allocation7 + $0x68] sm:$0xff]  ;;  %v96_v11 = vld [vmem:[#allocation7 + $0x60] sm:$0xff]  ;;  %v566_v22 = vpack.c.bf16 %v91_v20, %v87_v19  ;;  %v86_v23 = vld [vmem:[#allocation7 + $0x10] sm:$0xff] }
  0x4f   :  { %v538_v9 = vpack.c.bf16 %v97_v7, %v93_v6  ;;  %v101_v12 = vld [vmem:[#allocation7 + $0x88] sm:$0xff]  ;;  %535 = vmatprep.subr.bf16.mxu0 %v534_v4  ;;  %v540_v14 = vpack.c.bf16 %v96_v11, %v92_v10  ;;  %v100_v15 = vld [vmem:[#allocation7 + $0x80] sm:$0xff]  ;;  %v90_v24 = vld [vmem:[#allocation7 + $0x30] sm:$0xff] }
  0x50   :  { %v105_v13 = vld [vmem:[#allocation7 + $0xa8] sm:$0xff]  ;;  %537 = vmatpush1.bf16.msra.mxu0 %v536_v8  ;;  %v104_v16 = vld [vmem:[#allocation7 + $0xa0] sm:$0xff]  ;;  %v568_v25 = vpack.c.bf16 %v90_v24, %v86_v23  ;;  %567 = vmatprep.subr.bf16.mxu1 %v566_v22  ;;  %v95_v27 = vld [vmem:[#allocation7 + $0x58] sm:$0xff] }
  0x51   :  { %539 = vmatprep.subr.bf16.mxu0 %v538_v9  ;;  %v542_v17 = vpack.c.bf16 %v105_v13, %v101_v12  ;;  %v109_v18 = vld [vmem:[#allocation7 + $0xc8] sm:$0xff]  ;;  %v544_v26 = vpack.c.bf16 %v104_v16, %v100_v15  ;;  %v99_v28 = vld [vmem:[#allocation7 + $0x78] sm:$0xff]  ;;  %v94_v29 = vld [vmem:[#allocation7 + $0x50] sm:$0xff] }
  0x52   :  { %v113_v21 = vld [vmem:[#allocation7 + $0xe8] sm:$0xff]  ;;  %v108_v31 = vld [vmem:[#allocation7 + $0xc0] sm:$0xff]  ;;  %569 = vmatpush1.bf16.msra.mxu1 %v568_v25  ;;  %v570_v33 = vpack.c.bf16 %v99_v28, %v95_v27  ;;  %v98_v34 = vld [vmem:[#allocation7 + $0x70] sm:$0xff] }
  0x53   :  { %v546_v30 = vpack.c.bf16 %v113_v21, %v109_v18  ;;  %v112_v32 = vld [vmem:[#allocation7 + $0xe0] sm:$0xff]  ;;  %v117_v35 = vld [vmem:[#allocation7 + $0x108] sm:$0xff]  ;;  %v572_v37 = vpack.c.bf16 %v98_v34, %v94_v29  ;;  %v103_v38 = vld [vmem:[#allocation7 + $0x98] sm:$0xff] }
  0x54   :  { %541 = vmatpush1.bf16.msra.mxu0 %v540_v14  ;;  %v121_v36 = vld [vmem:[#allocation7 + $0x128] sm:$0xff]  ;;  %571 = vmatprep.subr.bf16.mxu1 %v570_v33  ;;  %v107_v39 = vld [vmem:[#allocation7 + $0xb8] sm:$0xff]  ;;  %v102_v40 = vld [vmem:[#allocation7 + $0x90] sm:$0xff]  ;;  %v548_v42 = vpack.c.bf16 %v112_v32, %v108_v31 }
  0x55   :  { %543 = vmatprep.subr.bf16.mxu0 %v542_v17  ;;  %v106_v41 = vld [vmem:[#allocation7 + $0xb0] sm:$0xff]  ;;  %v116_v43 = vld [vmem:[#allocation7 + $0x100] sm:$0xff]  ;;  %v574_v45 = vpack.c.bf16 %v107_v39, %v103_v38  ;;  %v550_v46 = vpack.c.bf16 %v121_v36, %v117_v35  ;;  %v125_v47 = vld [vmem:[#allocation7 + $0x148] sm:$0xff]  ;;  %v825_v38 = vmov 0.0|0.0  }
  0x56   :  { %v120_v44 = vld [vmem:[#allocation7 + $0x120] sm:$0xff]  ;;  %573 = vmatpush1.bf16.msra.mxu1 %v572_v37  ;;  %v576_v48 = vpack.c.bf16 %v106_v41, %v102_v40  ;;  %v111_v49 = vld [vmem:[#allocation7 + $0xd8] sm:$0xff]  ;;  %v129_v51 = vld [vmem:[#allocation7 + $0x168] sm:$0xff] }
  0x57   :  { %v115_v50 = vld [vmem:[#allocation7 + $0xf8] sm:$0xff]  ;;  %575 = vmatprep.subr.bf16.mxu1 %v574_v45  ;;  %v110_v53 = vld [vmem:[#allocation7 + $0xd0] sm:$0xff]  ;;  %v552_v55 = vpack.c.bf16 %v120_v44, %v116_v43  ;;  %v554_v58 = vpack.c.bf16 %v129_v51, %v125_v47  ;;  %v124_v59 = vld [vmem:[#allocation7 + $0x140] sm:$0xff] }
  0x58   :  { %545 = vmatpush1.bf16.msra.mxu0 %v544_v26  ;;  %v578_v52 = vpack.c.bf16 %v115_v50, %v111_v49  ;;  %v114_v54 = vld [vmem:[#allocation7 + $0xf0] sm:$0xff]  ;;  %v119_v56 = vld [vmem:[#allocation7 + $0x118] sm:$0xff]  ;;  %v128_v60 = vld [vmem:[#allocation7 + $0x160] sm:$0xff] }
  0x59   :  { %547 = vmatprep.subr.bf16.mxu0 %v546_v30  ;;  %v123_v57 = vld [vmem:[#allocation7 + $0x138] sm:$0xff]  ;;  %v133_v61 = vld [vmem:[#allocation7 + $0x188] sm:$0xff]  ;;  %v580_v62 = vpack.c.bf16 %v114_v54, %v110_v53  ;;  %v118_v2 = vld [vmem:[#allocation7 + $0x110] sm:$0xff]  ;;  %v556_v6 = vpack.c.bf16 %v128_v60, %v124_v59  ;;  %v150_v60 = vlaneseq }
  0x5a   :  { %577 = vmatpush1.bf16.msra.mxu1 %v576_v48  ;;  %v137_v63 = vld [vmem:[#allocation7 + $0x1a8] sm:$0xff]  ;;  %v582_v1 = vpack.c.bf16 %v123_v57, %v119_v56  ;;  %v122_v3 = vld [vmem:[#allocation7 + $0x130] sm:$0xff]  ;;  %v127_v4 = vld [vmem:[#allocation7 + $0x158] sm:$0xff] }
  0x5b   :  { %579 = vmatprep.subr.bf16.mxu1 %v578_v52  ;;  %v131_v5 = vld [vmem:[#allocation7 + $0x178] sm:$0xff]  ;;  %v558_v7 = vpack.c.bf16 %v137_v63, %v133_v61  ;;  %v132_v8 = vld [vmem:[#allocation7 + $0x180] sm:$0xff]  ;;  %v141_v10 = vld [vmem:[#allocation7 + $0x1c8] sm:$0xff]  ;;  %v584_v11 = vpack.c.bf16 %v122_v3, %v118_v2  ;;  %v151_v61 = vshrl.u32 %v150_v60, 7 }
  0x5c   :  { %549 = vmatpush1.bf16.msra.mxu0 %v548_v42  ;;  %v136_v9 = vld [vmem:[#allocation7 + $0x1a0] sm:$0xff]  ;;  %v145_v12 = vld [vmem:[#allocation7 + $0x1e8] sm:$0xff]  ;;  %v586_v13 = vpack.c.bf16 %v131_v5, %v127_v4  ;;  %v126_v14 = vld [vmem:[#allocation7 + $0x150] sm:$0xff] }
  0x5d   :  { %551 = vmatprep.subr.bf16.mxu0 %v550_v46  ;;  %v130_v15 = vld [vmem:[#allocation7 + $0x170] sm:$0xff]  ;;  %v135_v16 = vld [vmem:[#allocation7 + $0x198] sm:$0xff]  ;;  %v560_v18 = vpack.c.bf16 %v136_v9, %v132_v8  ;;  %v562_v19 = vpack.c.bf16 %v145_v12, %v141_v10  ;;  %v140_v20 = vld [vmem:[#allocation7 + $0x1c0] sm:$0xff]  ;;  %v164_v4 = vsub.s32 3, %v151_v61  ;;  %v160_v12 = vsub.s32 2, %v151_v61 }
  0x5e   :  { %581 = vmatpush1.bf16.msra.mxu1 %v580_v62  ;;  %v139_v17 = vld [vmem:[#allocation7 + $0x1b8] sm:$0xff]  ;;  %v144_v21 = vld [vmem:[#allocation7 + $0x1e0] sm:$0xff]  ;;  %v588_v22 = vpack.c.bf16 %v130_v15, %v126_v14  ;;  %v134_v24 = vld [vmem:[#allocation7 + $0x190] sm:$0xff]  ;;  %v152_v62 = vsub.s32 0, %v151_v61 }
  0x5f   :  { %583 = vmatprep.subr.bf16.mxu1 %v582_v1  ;;  %v590_v23 = vpack.c.bf16 %v139_v17, %v135_v16  ;;  %v138_v25 = vld [vmem:[#allocation7 + $0x1b0] sm:$0xff]  ;;  %v143_v26 = vld [vmem:[#allocation7 + $0x1d8] sm:$0xff]  ;;  %v564_v28 = vpack.c.bf16 %v144_v21, %v140_v20  ;;  %v340_v35 = vld [vmem:[#allocation8] sm:$0xff]  ;;  %v156_v1 = vsub.s32 1, %v151_v61 }
  0x60   :  { %553 = vmatpush1.bf16.msra.mxu0 %v552_v55  ;;  %v147_v27 = vld [vmem:[#allocation7 + $0x1f8] sm:$0xff]  ;;  %v592_v29 = vpack.c.bf16 %v138_v25, %v134_v24  ;;  %v142_v31 = vld [vmem:[#allocation7 + $0x1d0] sm:$0xff]  ;;  %v341_v36 = vld [vmem:[#allocation8 + $0x8] sm:$0xff] }
  0x61   :  { %555 = vmatprep.subr.bf16.mxu0 %v554_v58  ;;  %v594_v30 = vpack.c.bf16 %v147_v27, %v143_v26  ;;  %v146_v32 = vld [vmem:[#allocation7 + $0x1f0] sm:$0xff]  ;;  %v599_v37 = vpack.c.bf16 %v341_v36, %v340_v35  ;;  %v343_v40 = vld [vmem:[#allocation8 + $0x18] sm:$0xff]  ;;  %v344_v42 = vld [vmem:[#allocation8 + $0x20] sm:$0xff] }
  0x62   :  { %585 = vmatpush1.bf16.msra.mxu1 %v584_v11  ;;  %v83_v33 = vld [vmem:[#allocation2] sm:$0xff]  ;;  %v596_v34 = vpack.c.bf16 %v146_v32, %v142_v31  ;;  %v345_v43 = vld [vmem:[#allocation8 + $0x28] sm:$0xff]  ;;  %v347_v46 = vld [vmem:[#allocation8 + $0x38] sm:$0xff] }
  0x63   :  { %587 = vmatprep.subr.bf16.mxu1 %v586_v13  ;;  %v342_v39 = vld [vmem:[#allocation8 + $0x10] sm:$0xff]  ;;  %v605_v44 = vpack.c.bf16 %v345_v43, %v344_v42  ;;  %v348_v48 = vld [vmem:[#allocation8 + $0x40] sm:$0xff]  ;;  %v349_v49 = vld [vmem:[#allocation8 + $0x48] sm:$0xff] }
  0x64   :  { %557 = vmatpush1.bf16.msra.mxu0 %v556_v6  ;;  %v602_v41 = vpack.c.bf16 %v343_v40, %v342_v39  ;;  %v346_v45 = vld [vmem:[#allocation8 + $0x30] sm:$0xff]  ;;  %v611_v50 = vpack.c.bf16 %v349_v49, %v348_v48  ;;  %v351_v52 = vld [vmem:[#allocation8 + $0x58] sm:$0xff]  ;;  %v352_v54 = vld [vmem:[#allocation8 + $0x60] sm:$0xff] }
  0x65   :  { %559 = vmatprep.subr.bf16.mxu0 %v558_v7  ;;  %v608_v47 = vpack.c.bf16 %v347_v46, %v346_v45  ;;  %v350_v51 = vld [vmem:[#allocation8 + $0x50] sm:$0xff]  ;;  %v353_v55 = vld [vmem:[#allocation8 + $0x68] sm:$0xff]  ;;  %v355_v58 = vld [vmem:[#allocation8 + $0x78] sm:$0xff] }
  0x66   :  { %589 = vmatpush1.bf16.msra.mxu1 %v588_v22  ;;  %v614_v53 = vpack.c.bf16 %v351_v52, %v350_v51  ;;  %v617_v56 = vpack.c.bf16 %v353_v55, %v352_v54  ;;  %v354_v57 = vld [vmem:[#allocation8 + $0x70] sm:$0xff]  ;;  %v331_v24 = vld [vmem:[#allocation5] sm:$0xff] }
  0x67   :  { %591 = vmatprep.subr.bf16.mxu1 %v590_v23  ;;  %v620_v59 = vpack.c.bf16 %v355_v58, %v354_v57  ;;  %v148_v63 = vld [vmem:[%s971_s3] sm:$0xf]  ;;  %s827_s3 = smov [#allocation11]  }
  0x68   :  { %561 = vmatpush1.bf16.msra.mxu0 %v560_v18  ;;  %v153_v2 = vrot.slane %v148_v63, %v152_v62  ;;  %v157_v3 = vrot.slane %v148_v63, %v156_v1  ;;  %v165_v10 = vrot.slane %v148_v63, %v164_v4  ;;  %v161_v15 = vrot.slane %v148_v63, %v160_v12  ;;  %s450_s11 = sshll.u32 %s827_s3, 4  ;;  %s451_s11 = int_to_ptr.vmem [resolvable:$true] %s450_s11 }
  0x69   :  { %563 = vmatprep.subr.bf16.mxu0 %v562_v19  ;;  %s740_s12 = scalar_lea.vmem %s451_s11, 128  ;;  %p745_p5 = scmp.lt.s32.totalorder %s451_s11, %s451_s11 }
  0x6a   :  { %593 = vmatpush1.bf16.msra.mxu1 %v592_v29  ;;  %p741_p4 = scmp.ne.s32.totalorder %s451_s11, %s740_s12  ;;  %p746_p6 = scmp.lt.s32.totalorder %s740_s12, %s740_s12 }
  0x6b   :  { %595 = vmatprep.subr.bf16.mxu1 %v594_v30 }
  0x6c   :  { %565 = vmatpush1.bf16.msra.mxu0 %v564_v28  ;;  %p747_p7 = por %p746_p6, %p745_p5 }
  0x6d   :  { %598 = vmatprep.subr.bf16.mxu0 %v825_v38 }
  0x6e   :  { %597 = vmatpush1.bf16.msra.mxu1 %v596_v34  ;;  %p748_p8 = pnand %p747_p7, %p741_p4 }
  0x6f   :  { %235 = vmatmul.mubr.f32.vlgmr.msra.gmra.mrb[0].mxu0 %v83_v33 }
  0x70   :  { %600 = vmatpush3.bf16.msra.mxu0 %v599_v37  ;;  %531 = vmatprep.mubr.msk.f32.mxu0 %vm826_vm0, %v824_v0 }
  0x71   :  { %306 = vmatmul.mubr.f32.vlgmr.msra.gmra.mrb[0].mxu1 %v83_v33  ;;  %601 = vmatprep.subr.bf16.mxu0 %v825_v38 }
  0x74   :  { %603 = vmatpush3.bf16.msra.mxu0 %v602_v41 }
  0x75   :  { %604 = vmatprep.subr.bf16.mxu0 %v825_v38 }
  0x78   :  { %606 = vmatpush3.bf16.msra.mxu0 %v605_v44 }
  0x79   :  { %607 = vmatprep.subr.bf16.mxu0 %v825_v38 }
  0x7c   :  { %609 = vmatpush3.bf16.msra.mxu0 %v608_v47 }
  0x7d   :  { %610 = vmatprep.subr.bf16.mxu0 %v825_v38 }
  0x80   :  { %612 = vmatpush3.bf16.msra.mxu0 %v611_v50 }
  0x81   :  { %613 = vmatprep.subr.bf16.mxu0 %v825_v38 }
  0x84   :  { %615 = vmatpush3.bf16.msra.mxu0 %v614_v53 }
  0x85   :  { %616 = vmatprep.subr.bf16.mxu0 %v825_v38 }
  0x88   :  { %618 = vmatpush3.bf16.msra.mxu0 %v617_v56 }
  0x89   :  { %619 = vmatprep.subr.bf16.mxu0 %v825_v38 }
  0x8c   :  { %621 = vmatpush3.bf16.msra.mxu0 %v620_v59 }
 0x142   :  { %v236_v5 = vpop.f32.mrb[0].mxu0 }
 0x143   :  { %v237_v6 = vadd.f32 %v236_v5, %v153_v2  ;;  %v238_v7 = vpop.f32.mrb[1].mxu0 }
 0x144   :  { %v239_v8 = vadd.f32 %v238_v7, %v157_v3  ;;  %v307_v0 = vpop.f32.mrb[0].mxu1 }
 0x145   :  { %v478_v9 = vmul.f32 -1.442695, %v237_v6  ;;  %v309_v13 = vpop.f32.mrb[1].mxu1  ;;  %v308_v17 = vadd.f32 %v307_v0, %v161_v15 }
 0x146   :  { %v479_v11 = vmul.f32 -1.442695, %v239_v8  ;;  %v310_v14 = vadd.f32 %v309_v13, %v165_v10 }
 0x147   :  { %636 = vpow2.f32 %v478_v9 }
 0x148   :  { %638 = vpow2.f32 %v479_v11  ;;  %v480_v16 = vmul.f32 -1.442695, %v310_v14 }
 0x14a   :  { %640 = vpow2.f32 %v480_v16 }
 0x14b   :  { %642 = vtanh.f32 %v308_v17 }
 0x151   :  { %v637_v18 = vpop.eup %636 }
 0x152   :  { %v639_v19 = vpop.eup %638  ;;  %v315_v20 = vadd.f32 1.0, %v637_v18 }
 0x153   :  { %v321_v21 = vadd.f32 1.0, %v639_v19 }
 0x154   :  { %644 = vrcp.f32 %v315_v20  ;;  %v641_v22 = vpop.eup %640 }
 0x155   :  { %646 = vrcp.f32 %v321_v21  ;;  %v643_v23 = vpop.eup %642  ;;  %v328_v26 = vadd.f32 1.0, %v641_v22 }
 0x157   :  { %648 = vrcp.f32 %v328_v26 }
 0x15e   :  { %v645_v25 = vpop.eup %644 }
 0x15f   :  { %v647_v27 = vpop.eup %646  ;;  %v333_v28 = vmul.f32 %v645_v25, %v643_v23 }
 0x160   :  { %v332_v29 = vmul.f32 %v647_v27, %v331_v24 }
 0x161   :  { %v649_v31 = vpop.eup %648 }
 0x162   :  { %v334_v30 = vadd.f32 %v333_v28, %v332_v29 }
 0x164   :  { %650 = vtanh.f32 %v334_v30  ;;  %335 = vst [vmem:[#allocation13] sm:$0xff] %v334_v30 }
 0x16e   :  { %v651_v32 = vpop.eup %650 }
 0x16f   :  { %v337_v33 = vmul.f32 %v651_v32, %v649_v31 }
 0x171   :  { %338 = vst [vmem:[#allocation11] sm:$0xff] %v337_v33  ;;  %532 = vmatmul.mubr.f32.vlgmr.msra.gmra.mrb[2].mxu0 %v337_v33 }
 0x172   :  { %751 = shalt.err (!%p748_p8)
}
 0x173   :  { %s752_s15 = scalar_lea.hbm %s975_s7, 128 }
 0x174   :  { %p753_p9 = scmp.ne.s32.totalorder %s975_s7, %s752_s15  ;;  %p756_p10 = scmp.lt.u32.totalorder %s752_s15, %s975_s7 }
 0x176   :  { %p758_p11 = pnand %p756_p10, %p753_p9 }
 0x178   :  { %761 = shalt.err (!%p758_p11)
}
 0x179   :  { %453 = dma.vmem_to_hbm [thread:$0]  %s451_s11, 128, %s975_s7, [#allocation12]  }
 0x17a   :  { %s828_s20 = smov [#allocation13]  }
 0x17b   :  { %s460_s21 = sshll.u32 %s828_s20, 4  ;;  %s461_s21 = int_to_ptr.vmem [resolvable:$true] %s460_s21 }
 0x17c   :  { %s762_s22 = scalar_lea.vmem %s461_s21, 128  ;;  %p767_p13 = scmp.lt.s32.totalorder %s461_s21, %s461_s21 }
 0x17d   :  { %p763_p12 = scmp.ne.s32.totalorder %s461_s21, %s762_s22  ;;  %p768_p0 = scmp.lt.s32.totalorder %s762_s22, %s762_s22 }
 0x17f   :  { %p769_p1 = por %p768_p0, %p767_p13 }
 0x181   :  { %p770_p2 = pnand %p769_p1, %p763_p12 }
 0x183   :  { %773 = shalt.err (!%p770_p2)
}
 0x184   :  { %s774_s25 = scalar_lea.hbm %s976_s8, 128 }
 0x185   :  { %p775_p3 = scmp.ne.s32.totalorder %s976_s8, %s774_s25  ;;  %p778_p4 = scmp.lt.u32.totalorder %s774_s25, %s976_s8 }
 0x187   :  { %p780_p5 = pnand %p778_p4, %p775_p3 }
 0x189   :  { %783 = shalt.err (!%p780_p5)
}
 0x18a   :  { %463 = dma.vmem_to_hbm [thread:$0]  %s461_s21, 128, %s976_s8, [#allocation12]   ;;  %v481_v34 = vld [vmem:[%s973_s5] ss:$0 sm:$0xff] }
 0x18b   :  { %s829_s4 = smov [#allocation10]  }
 0x18c   :  { %s440_s10 = sshll.u32 %s829_s4, 4  ;;  %s441_s10 = int_to_ptr.vmem [resolvable:$true] %s440_s10 }
 0x18d   :  { %s784_s3 = scalar_lea.vmem %s441_s10, 128  ;;  %p789_p7 = scmp.lt.s32.totalorder %s441_s10, %s441_s10 }
 0x18e   :  { %p785_p6 = scmp.ne.s32.totalorder %s441_s10, %s784_s3  ;;  %p790_p8 = scmp.lt.s32.totalorder %s784_s3, %s784_s3 }
 0x190   :  { %p791_p9 = por %p790_p8, %p789_p7 }
 0x192   :  { %p792_p10 = pnand %p791_p9, %p785_p6 }
 0x244   :  { %v429_v35 = vpop.f32.mrb[2].mxu0 }
 0x245   :  { %v430_v36 = vadd.f32 %v481_v34, %v429_v35  ;;  %v533_v37 = vpop.f32.mrb[3].mxu0 }
 0x247   :  { %433 = vst [vmem:[#allocation10] sm:$0xff] %v430_v36 }
 0x248   :  { %795 = shalt.err (!%p792_p10)
}
 0x249   :  { %s796_s12 = scalar_lea.hbm %s974_s6, 128 }
 0x24a   :  { %p797_p11 = scmp.ne.s32.totalorder %s974_s6, %s796_s12  ;;  %p800_p12 = scmp.lt.u32.totalorder %s796_s12, %s974_s6 }
 0x24c   :  { %p802_p13 = pnand %p800_p12, %p797_p11 }
 0x24e   :  { %805 = shalt.err (!%p802_p13)
}
 0x24f   :  { %443 = dma.vmem_to_hbm [thread:$0]  %s441_s10, 128, %s974_s6, [#allocation4]  }
 0x250   :  { %812 = dma.done.wait [#allocation4], 128  }
 0x251   :  { %813 = vsyncadd [#allocation4], 4294967168 }
 0x252   :  { %814 = dma.done.wait [#allocation12], 256  }
 0x253   :  { %815 = vsyncadd [#allocation12], 4294967040 }
 0x254   :  { %473 = vsyncpa [#allocation3], 1 }
 0x255   :  { %474 = vsyncpa [#allocation6], 1 }
 0x256   :  { %475 = vsyncpa [#allocation9], 1 }
 0x257   :  { %476 = vsyncpa [#allocation4], 1 }
 0x258   :  { %477 = vsyncpa [#allocation12], 1 }

</bundles_post_ra>
